<compile_context>
chip_gen: v7x
topology: tpu7x:2x2x1
jax: 0.10.0
libtpu: 0.0.40
codegen_flags: <defaults>
</compile_context>

<pallas_src>
import numpy as np
import jax
import jax.numpy as jnp
from jax.experimental import pallas as pl
from jax.experimental.pallas import tpu as pltpu


def _round_up(x, m):
    return ((x + m - 1) // m) * m


def _vmem_limit_bytes():
    """~3/4 of physical VMEM, capped at 100 MiB (v5e/v6e -> ~96 MiB, v7x -> 48 MiB)."""
    try:
        cap = int(pltpu.get_tpu_info().vmem_capacity_bytes)
        return int(min(cap * 3 // 4, 100 * 1024 * 1024))
    except Exception:
        return 48 * 1024 * 1024


def _pick_image_batch(n, per_image_bytes, budget):
    """Largest divisor of n fitting the VMEM budget; prefer >=2 grid steps so
    both TensorCores get work on megacore parts."""
    bmax = max(1, min(16, int(budget // max(per_image_bytes, 1)), n))
    divs = [d for d in range(1, n + 1) if n % d == 0 and d <= bmax]
    multi = [d for d in divs if n // d >= 2]
    return max(multi) if multi else max(divs)


def _pick_spatial_tile(hwp, bytes_per_col, budget):
    """Largest lane tile dividing HWp, multiple of 128, fitting the byte budget."""
    tl = hwp
    while tl % 256 == 0 and bytes_per_col * tl > budget:
        tl //= 2
    return tl


def _contiguous_segments(dataset_id):
    """Per-image segment index for contiguous runs of equal dataset ids
    (matches the PyTorch cur_pos loop)."""
    seg_of = np.zeros(len(dataset_id), dtype=np.int32)
    seg, cur = 0, 0
    for i in range(1, len(dataset_id)):
        if dataset_id[i] != dataset_id[cur]:
            seg += 1
            cur = i
        seg_of[i] = seg
    return seg_of


# ----------------------------------------------------------------------------
# Kernel 1: 3x3 conv (stride 1, pad 1, no bias) over a batch of B images per
# grid step + fused per-image BN statistics.
# ----------------------------------------------------------------------------
def _make_conv3x3_kernel(H, W, HW, HWp, Cin_pad, Cout, B, pad_off, padw):
    ragged = HWp != HW

    def kernel(x_ref, w_ref, m_ref, o_ref, stats_ref, xflat_ref, col_ref):
        # x_ref    : (B, Cin_pad, HWp)   bf16, flattened + channel/spatial pad
        # w_ref    : (Cout, 9*Cin_pad)   bf16 conv weight, taps folded into K
        # m_ref    : (3, HWp)            bf16 [kill w==0, kill w==W-1, valid]
        # o_ref    : (B, Cout, HWp)      bf16 conv output (lane dim = HWp)
        # stats_ref: (1, Cout, 2*B)      f32 [per-image sums | sum-of-squares]
        # xflat_ref: (B, Cin_pad, padw)  zero-haloed flat images (VMEM scratch)
        # col_ref  : (9*Cin_pad, B*HWp)  transposed im2col slab (VMEM scratch)

        # Zero only the halo columns; the interior (incl. zero-padded channels
        # and spatial tail) is overwritten from the input every step, so there
        # is no reliance on scratch persistence -> safe under "parallel".
        xflat_ref[:, :, 0:pad_off] = jnp.zeros(
            (B, Cin_pad, pad_off), dtype=xflat_ref.dtype)
        xflat_ref[:, :, pad_off + HWp:padw] = jnp.zeros(
            (B, Cin_pad, padw - pad_off - HWp), dtype=xflat_ref.dtype)
        xflat_ref[:, :, pad_off:pad_off + HWp] = x_ref[...]

        m0 = m_ref[0:1, :]
        m1 = m_ref[1:2, :]
        # TODO(synk): on v5e (no bf16 VALU) the edge-mask multiply should be a
        # masked store / f32 multiply; neutral on v6e/v7x.
        for kh in range(3):
            for kw in range(3):
                tap = kh * 3 + kw
                s = pad_off + (kh - 1) * W + (kw - 1)
                for b in range(B):
                    # TODO(synk): the +/-1, +/-W lane starts are unaligned and
                    # lower to XLU rotations; a pltpu.roll-based variant on
                    # resident data would avoid per-tap VMEM re-slicing.
                    patch = xflat_ref[b, :, s:s + HWp]        # (Cin_pad, HWp)
                    if kw == 0:      # col w-1 wrapped from the previous row
                        patch = patch * m0
                    elif kw == 2:    # col w+1 wrapped from the next row
                        patch = patch * m1
                    col_ref[tap * Cin_pad:(tap + 1) * Cin_pad,
                            b * HWp:(b + 1) * HWp] = patch

        # One MXU matmul: (Cout, 9*Cin_pad) x (9*Cin_pad, B*HWp), f32 acc.
        acc = jnp.dot(w_ref[...], col_ref[...],
                      preferred_element_type=jnp.float32)     # (Cout, B*HWp)

        sums, ssqs = [], []
        if ragged:
            valid = m_ref[2:3, :].astype(jnp.float32)
        for b in range(B):
            a = acc[:, b * HWp:(b + 1) * HWp]                 # (Cout, HWp) f32
            o_ref[b] = a.astype(o_ref.dtype)                  # bf16 feat store
            if ragged:
                a = a * valid                                 # drop pad pixels
            sums.append(jnp.sum(a, axis=1, keepdims=True))
            ssqs.append(jnp.sum(a * a, axis=1, keepdims=True))
        stats_ref[0] = jnp.concatenate(sums + ssqs, axis=1)   # (Cout, 2*B)

    return kernel


def _conv3x3_with_stats(x_in, w_folded, masks, H, W, HW, HWp, Cin_pad, Cout,
                        B, pad_off, padw, vmem_limit):
    N = x_in.shape[0]
    ng = N // B
    kernel = _make_conv3x3_kernel(H, W, HW, HWp, Cin_pad, Cout, B, pad_off, padw)

    # TODO(synk): for very large Cin*H*W the im2col slab should be row-tiled
    # (1-row halo) or replaced by 9 tap-accumulated matmuls (cheap with v7x's
    # MRB) to stay inside 64 MiB VMEM; not needed at these shapes.
    return pl.pallas_call(
        kernel,
        out_shape=(
            jax.ShapeDtypeStruct((N, Cout, HWp), jnp.bfloat16),
            jax.ShapeDtypeStruct((ng, Cout, 2 * B), jnp.float32),
        ),
        grid=(ng,),
        in_specs=[
            pl.BlockSpec((B, Cin_pad, HWp), lambda g: (g, 0, 0)),
            pl.BlockSpec((Cout, 9 * Cin_pad), lambda g: (0, 0)),
            pl.BlockSpec((3, HWp), lambda g: (0, 0)),
        ],
        out_specs=(
            pl.BlockSpec((B, Cout, HWp), lambda g: (g, 0, 0)),
            pl.BlockSpec((1, Cout, 2 * B), lambda g: (g, 0, 0)),
        ),
        scratch_shapes=[
            pltpu.VMEM((B, Cin_pad, padw), jnp.bfloat16),
            pltpu.VMEM((9 * Cin_pad, B * HWp), jnp.bfloat16),
        ],
        compiler_params=pltpu.CompilerParams(
            dimension_semantics=("parallel",),
            vmem_limit_bytes=int(vmem_limit),
        ),
    )(x_in, w_folded, masks)


# ----------------------------------------------------------------------------
# Kernel 2: tiled normalize + shared affine + ReLU (lane-dense, megacore).
# ----------------------------------------------------------------------------
def _norm_affine_relu_kernel(f_ref, scale_ref, shift_ref, o_ref):
    # f_ref: (B, Cout, TL) bf16; scale/shift: (B, Cout, 1) f32; o_ref f32.
    f = f_ref[...].astype(jnp.float32)
    o_ref[...] = jnp.maximum(f * scale_ref[...] + shift_ref[...], 0.0)


def _norm_affine_relu(feat, scale, shift, B, vmem_limit):
    N, Cout, HWp = feat.shape
    bytes_per_col = B * Cout * (2 * 2 + 2 * 4)     # bf16 in + f32 out, dbuf'd
    tl = _pick_spatial_tile(HWp, bytes_per_col,
                            budget=min(8 << 20, vmem_limit // 4))
    nt = HWp // tl
    return pl.pallas_call(
        _norm_affine_relu_kernel,
        out_shape=jax.ShapeDtypeStruct((N, Cout, HWp), jnp.float32),
        grid=(N // B, nt),
        in_specs=[
            pl.BlockSpec((B, Cout, tl), lambda g, t: (g, 0, t)),
            pl.BlockSpec((B, Cout, 1), lambda g, t: (g, 0, 0)),
            pl.BlockSpec((B, Cout, 1), lambda g, t: (g, 0, 0)),
        ],
        out_specs=pl.BlockSpec((B, Cout, tl), lambda g, t: (g, 0, t)),
        compiler_params=pltpu.CompilerParams(
            dimension_semantics=("parallel", "parallel"),
            vmem_limit_bytes=int(vmem_limit),
        ),
    )(feat, scale, shift)


# ----------------------------------------------------------------------------
# Full ConvBNReLU.forward equivalent.
# ----------------------------------------------------------------------------
def conv_bn_relu(x_nchw, dataset_id, w_oihw, affine_weight, affine_bias,
                 eps=1e-5):
    """x_nchw: (N, Cin, H, W) f32; dataset_id: host list of ints (len N);
    w_oihw: (Cout, Cin, 3, 3); affine_*: (Cout,).  Returns (N, Cout, H, W) f32."""
    N, Cin, H, W = x_nchw.shape
    Cout = w_oihw.shape[0]
    HW = H * W

    # --- layout constants ---------------------------------------------------
    HWp = _round_up(HW, 128)                       # lane-dense spatial extent
    Cin_pad = _round_up(Cin, 16)                   # bf16 sublane tile
    pad_off = _round_up(W + 1, 128)                # leading halo, lane aligned
    padw = _round_up(pad_off + HWp + W + 1, 128)   # trailing halo >= W+1
    vmem_limit = _vmem_limit_bytes()
    per_image = (2 * Cin_pad * HWp * 2             # x block, double-buffered
                 + 2 * Cout * HWp * 2              # bf16 feat block, dbuf'd
                 + Cin_pad * padw * 2              # xflat scratch
                 + 9 * Cin_pad * HWp * 2)          # im2col scratch
    B = _pick_image_batch(N, per_image, budget=vmem_limit // 3)

    # --- input / weight prep (tiny one-shot HBM ops; no NCHW<->NHWC) --------
    x_flat = x_nchw.reshape(N, Cin, HW)
    if Cin_pad != Cin or HWp != HW:
        x_flat = jnp.pad(x_flat, ((0, 0), (0, Cin_pad - Cin), (0, HWp - HW)))
    x_in = x_flat.astype(jnp.bfloat16)

    w_k = jnp.transpose(w_oihw, (0, 2, 3, 1))      # (Cout, 3, 3, Cin)
    if Cin_pad != Cin:
        w_k = jnp.pad(w_k, ((0, 0), (0, 0), (0, 0), (0, Cin_pad - Cin)))
    w_folded = w_k.reshape(Cout, 9 * Cin_pad).astype(jnp.bfloat16)

    pos = np.arange(HWp)
    wcol = pos % W
    masks = jnp.asarray(np.stack([
        (wcol != 0), (wcol != W - 1), (pos < HW)]).astype(np.float32)
    ).astype(jnp.bfloat16)                          # (3, HWp)

    # --- conv + fused per-image BN statistics (Pallas kernel 1) -------------
    feat, stats = _conv3x3_with_stats(
        x_in, w_folded, masks, H, W, HW, HWp, Cin_pad, Cout, B, pad_off, padw,
        vmem_limit)
    sum_img = jnp.transpose(stats[:, :, :B], (0, 2, 1)).reshape(N, Cout)
    ssq_img = jnp.transpose(stats[:, :, B:], (0, 2, 1)).reshape(N, Cout)

    # --- per-segment BN statistics: tiny (N, Cout) math in plain JAX --------
    seg_np = _contiguous_segments(dataset_id)
    nseg = int(seg_np.max()) + 1
    run_len = np.bincount(seg_np, minlength=nseg)
    npix = jnp.asarray(run_len[seg_np] * HW, dtype=jnp.float32)[:, None]    # (N,1)
    onehot = jnp.asarray(
        (seg_np[:, None] == np.arange(nseg)[None, :]).astype(np.float32))   # (N,S)

    sum_seg = onehot.T @ sum_img                   # (S, Cout)
    ssq_seg = onehot.T @ ssq_img
    mean = (onehot @ sum_seg) / npix               # broadcast back per image
    var = jnp.maximum((onehot @ ssq_seg) / npix - mean * mean, 0.0)
    inv = jax.lax.rsqrt(var + eps)
    scale = affine_weight[None, :].astype(jnp.float32) * inv                # (N,Cout)
    shift = affine_bias[None, :].astype(jnp.float32) - mean * scale

    # TODO(synk): nn.BatchNorm2d running_mean/var updates are a training-time
    # side effect with no influence on this forward output; not reproduced.

    # --- normalize + affine + ReLU (Pallas kernel 2) -------------------------
    out = _norm_affine_relu(feat, scale[:, :, None], shift[:, :, None], B,
                            vmem_limit)
    if HWp != HW:
        out = out[:, :, :HW]
    return out.reshape(N, Cout, H, W)


# ----------------------------------------------------------------------------
# Pure-JAX reference (same bf16-into-MXU convention as the kernel).
# ----------------------------------------------------------------------------
def _reference(x_nchw, dataset_id, w_oihw, affine_weight, affine_bias, eps=1e-5):
    feat = jax.lax.conv_general_dilated(
        x_nchw.astype(jnp.bfloat16), w_oihw.astype(jnp.bfloat16),
        window_strides=(1, 1), padding=((1, 1), (1, 1)),
        dimension_numbers=("NCHW", "OIHW", "NCHW"),
        preferred_element_type=jnp.float32)
    seg_np = _contiguous_segments(dataset_id)
    outs = []
    for s in range(int(seg_np.max()) + 1):
        idx = np.where(seg_np == s)[0]
        f = feat[int(idx[0]):int(idx[-1]) + 1]
        mean = jnp.mean(f, axis=(0, 2, 3), keepdims=True)
        var = jnp.mean((f - mean) ** 2, axis=(0, 2, 3), keepdims=True)
        outs.append((f - mean) * jax.lax.rsqrt(var + eps))
    f = jnp.concatenate(outs, axis=0)
    f = f * affine_weight.reshape(1, -1, 1, 1) + affine_bias.reshape(1, -1, 1, 1)
    return jnp.maximum(f, 0.0)


if __name__ == "__main__":
    key = jax.random.PRNGKey(0)
    k_x, k_w, k_aw, k_ab = jax.random.split(key, 4)

    N, Cin, Cout, H, W = 4, 4, 8, 16, 16
    dataset_id = [0, 0, 1, 1]          # two contiguous segments (n_bn = 2)

    x = jax.random.normal(k_x, (N, Cin, H, W), jnp.float32)
    conv_w = jax.random.normal(k_w, (Cout, Cin, 3, 3), jnp.float32) * 0.1
    affine_w = jax.random.normal(k_aw, (Cout,), jnp.float32) * 0.5 + 1.0
    affine_b = jax.random.normal(k_ab, (Cout,), jnp.float32) * 0.1

    out = conv_bn_relu(x, dataset_id, conv_w, affine_w, affine_b)
    out = jax.block_until_ready(out)

    ref = _reference(x, dataset_id, conv_w, affine_w, affine_b)
    assert out.shape == (N, Cout, H, W)
    max_err = float(jnp.max(jnp.abs(out - ref)))
    # Tolerance covers bf16 MXU inputs + bf16 storage of the intermediate feat.
    assert jnp.allclose(out, ref, atol=2e-2, rtol=2e-2), (
        f"mismatch vs reference, max abs err = {max_err}")

    print("KERNEL_OK")
</pallas_src>

<mosaic_0001>
module attributes {stable_mosaic.version = 11 : i64} {
  func.func @kernel(%arg0: i32, %arg1: memref<2x16x256xbf16, #tpu.memory_space<vmem>>, %arg2: memref<8x144xbf16, #tpu.memory_space<vmem>>, %arg3: memref<3x256xbf16, #tpu.memory_space<vmem>>, %arg4: memref<2x8x256xbf16, #tpu.memory_space<vmem>>, %arg5: memref<1x8x4xf32, #tpu.memory_space<vmem>>, %arg6: memref<2x16x512xbf16, #tpu.memory_space<vmem>>, %arg7: memref<144x512xbf16, #tpu.memory_space<vmem>>) attributes {dimension_semantics = [#tpu.dimension_semantics<parallel>], iteration_bounds = array<i64: 2>, scalar_prefetch = 0 : i64, scratch_operands = 2 : i64, tpu.core_type = #tpu.core_type<tc>, window_params = [{transform_indices = @transform_0, window_bounds = array<i64: 2, 16, 256>}, {pipeline_mode = #tpu.pipeline_mode<synchronous>, transform_indices = @transform_1, window_bounds = array<i64: 8, 144>}, {pipeline_mode = #tpu.pipeline_mode<synchronous>, transform_indices = @transform_2, window_bounds = array<i64: 3, 256>}, {transform_indices = @transform_3, window_bounds = array<i64: 2, 8, 256>}, {transform_indices = @transform_4, window_bounds = array<i64: 1, 8, 4>}]} {
    %cst = arith.constant 0.000000e+00 : bf16
    %0 = vector.broadcast %cst : bf16 to vector<2x16x128xbf16>
    %c0 = arith.constant 0 : index
    %c0_0 = arith.constant 0 : index
    %c0_1 = arith.constant 0 : index
    %1 = vector.load %arg6[%c0, %c0_0, %c0_1] : memref<2x16x512xbf16, #tpu.memory_space<vmem>>, vector<2x16x128xbf16>
    tpu.vector_store %arg6[%c0, %c0_0, %c0_1], %0 {strides = array<i32>} : memref<2x16x512xbf16, #tpu.memory_space<vmem>>, vector<2x16x128xbf16>,
    %cst_2 = arith.constant 0.000000e+00 : bf16
    %2 = vector.broadcast %cst_2 : bf16 to vector<2x16x128xbf16>
    %c0_3 = arith.constant 0 : index
    %c0_4 = arith.constant 0 : index
    %c384 = arith.constant 384 : index
    %3 = vector.load %arg6[%c0_3, %c0_4, %c384] : memref<2x16x512xbf16, #tpu.memory_space<vmem>>, vector<2x16x128xbf16>
    tpu.vector_store %arg6[%c0_3, %c0_4, %c384], %2 {strides = array<i32>} : memref<2x16x512xbf16, #tpu.memory_space<vmem>>, vector<2x16x128xbf16>,
    %c0_5 = arith.constant 0 : index
    %c0_6 = arith.constant 0 : index
    %c0_7 = arith.constant 0 : index
    %4 = vector.load %arg1[%c0_5, %c0_6, %c0_7] : memref<2x16x256xbf16, #tpu.memory_space<vmem>>, vector<2x16x256xbf16>
    %c0_8 = arith.constant 0 : index
    %c0_9 = arith.constant 0 : index
    %c128 = arith.constant 128 : index
    %5 = vector.load %arg6[%c0_8, %c0_9, %c128] : memref<2x16x512xbf16, #tpu.memory_space<vmem>>, vector<2x16x256xbf16>
    tpu.vector_store %arg6[%c0_8, %c0_9, %c128], %4 {strides = array<i32>} : memref<2x16x512xbf16, #tpu.memory_space<vmem>>, vector<2x16x256xbf16>,
    %c0_10 = arith.constant 0 : index
    %c0_11 = arith.constant 0 : index
    %6 = vector.load %arg3[%c0_10, %c0_11] : memref<3x256xbf16, #tpu.memory_space<vmem>>, vector<1x256xbf16>
    %c1 = arith.constant 1 : index
    %c0_12 = arith.constant 0 : index
    %7 = vector.load %arg3[%c1, %c0_12] : memref<3x256xbf16, #tpu.memory_space<vmem>>, vector<1x256xbf16>
    %c0_13 = arith.constant 0 : index
    %c0_14 = arith.constant 0 : index
    %c111 = arith.constant 111 : index
    %8 = vector.load %arg6[%c0_13, %c0_14, %c111] : memref<2x16x512xbf16, #tpu.memory_space<vmem>>, vector<1x16x256xbf16>
    %9 = vector.shape_cast %8 : vector<1x16x256xbf16> to vector<16x256xbf16>
    %10 = vector.broadcast %6 : vector<1x256xbf16> to vector<16x256xbf16>
    %11 = arith.mulf %9, %10 : vector<16x256xbf16>
    %c0_15 = arith.constant 0 : index
    %c0_16 = arith.constant 0 : index
    %12 = vector.load %arg7[%c0_15, %c0_16] : memref<144x512xbf16, #tpu.memory_space<vmem>>, vector<16x256xbf16>
    tpu.vector_store %arg7[%c0_15, %c0_16], %11 {strides = array<i32>} : memref<144x512xbf16, #tpu.memory_space<vmem>>, vector<16x256xbf16>,
    %c1_17 = arith.constant 1 : index
    %c0_18 = arith.constant 0 : index
    %c111_19 = arith.constant 111 : index
    %13 = vector.load %arg6[%c1_17, %c0_18, %c111_19] : memref<2x16x512xbf16, #tpu.memory_space<vmem>>, vector<1x16x256xbf16>
    %14 = vector.shape_cast %13 : vector<1x16x256xbf16> to vector<16x256xbf16>
    %15 = vector.broadcast %6 : vector<1x256xbf16> to vector<16x256xbf16>
    %16 = arith.mulf %14, %15 : vector<16x256xbf16>
    %c0_20 = arith.constant 0 : index
    %c256 = arith.constant 256 : index
    %17 = vector.load %arg7[%c0_20, %c256] : memref<144x512xbf16, #tpu.memory_space<vmem>>, vector<16x256xbf16>
    tpu.vector_store %arg7[%c0_20, %c256], %16 {strides = array<i32>} : memref<144x512xbf16, #tpu.memory_space<vmem>>, vector<16x256xbf16>,
    %c0_21 = arith.constant 0 : index
    %c0_22 = arith.constant 0 : index
    %c112 = arith.constant 112 : index
    %18 = vector.load %arg6[%c0_21, %c0_22, %c112] : memref<2x16x512xbf16, #tpu.memory_space<vmem>>, vector<1x16x256xbf16>
    %19 = vector.shape_cast %18 : vector<1x16x256xbf16> to vector<16x256xbf16>
    %c16 = arith.constant 16 : index
    %c0_23 = arith.constant 0 : index
    %20 = vector.load %arg7[%c16, %c0_23] : memref<144x512xbf16, #tpu.memory_space<vmem>>, vector<16x256xbf16>
    tpu.vector_store %arg7[%c16, %c0_23], %19 {strides = array<i32>} : memref<144x512xbf16, #tpu.memory_space<vmem>>, vector<16x256xbf16>,
    %c1_24 = arith.constant 1 : index
    %c0_25 = arith.constant 0 : index
    %c112_26 = arith.constant 112 : index
    %21 = vector.load %arg6[%c1_24, %c0_25, %c112_26] : memref<2x16x512xbf16, #tpu.memory_space<vmem>>, vector<1x16x256xbf16>
    %22 = vector.shape_cast %21 : vector<1x16x256xbf16> to vector<16x256xbf16>
    %c16_27 = arith.constant 16 : index
    %c256_28 = arith.constant 256 : index
    %23 = vector.load %arg7[%c16_27, %c256_28] : memref<144x512xbf16, #tpu.memory_space<vmem>>, vector<16x256xbf16>
    tpu.vector_store %arg7[%c16_27, %c256_28], %22 {strides = array<i32>} : memref<144x512xbf16, #tpu.memory_space<vmem>>, vector<16x256xbf16>,
    %c0_29 = arith.constant 0 : index
    %c0_30 = arith.constant 0 : index
    %c113 = arith.constant 113 : index
    %24 = vector.load %arg6[%c0_29, %c0_30, %c113] : memref<2x16x512xbf16, #tpu.memory_space<vmem>>, vector<1x16x256xbf16>
    %25 = vector.shape_cast %24 : vector<1x16x256xbf16> to vector<16x256xbf16>
    %26 = vector.broadcast %7 : vector<1x256xbf16> to vector<16x256xbf16>
    %27 = arith.mulf %25, %26 : vector<16x256xbf16>
    %c32 = arith.constant 32 : index
    %c0_31 = arith.constant 0 : index
    %28 = vector.load %arg7[%c32, %c0_31] : memref<144x512xbf16, #tpu.memory_space<vmem>>, vector<16x256xbf16>
    tpu.vector_store %arg7[%c32, %c0_31], %27 {strides = array<i32>} : memref<144x512xbf16, #tpu.memory_space<vmem>>, vector<16x256xbf16>,
    %c1_32 = arith.constant 1 : index
    %c0_33 = arith.constant 0 : index
    %c113_34 = arith.constant 113 : index
    %29 = vector.load %arg6[%c1_32, %c0_33, %c113_34] : memref<2x16x512xbf16, #tpu.memory_space<vmem>>, vector<1x16x256xbf16>
    %30 = vector.shape_cast %29 : vector<1x16x256xbf16> to vector<16x256xbf16>
    %31 = vector.broadcast %7 : vector<1x256xbf16> to vector<16x256xbf16>
    %32 = arith.mulf %30, %31 : vector<16x256xbf16>
    %c32_35 = arith.constant 32 : index
    %c256_36 = arith.constant 256 : index
    %33 = vector.load %arg7[%c32_35, %c256_36] : memref<144x512xbf16, #tpu.memory_space<vmem>>, vector<16x256xbf16>
    tpu.vector_store %arg7[%c32_35, %c256_36], %32 {strides = array<i32>} : memref<144x512xbf16, #tpu.memory_space<vmem>>, vector<16x256xbf16>,
    %c0_37 = arith.constant 0 : index
    %c0_38 = arith.constant 0 : index
    %c127 = arith.constant 127 : index
    %34 = vector.load %arg6[%c0_37, %c0_38, %c127] : memref<2x16x512xbf16, #tpu.memory_space<vmem>>, vector<1x16x256xbf16>
    %35 = vector.shape_cast %34 : vector<1x16x256xbf16> to vector<16x256xbf16>
    %36 = vector.broadcast %6 : vector<1x256xbf16> to vector<16x256xbf16>
    %37 = arith.mulf %35, %36 : vector<16x256xbf16>
    %c48 = arith.constant 48 : index
    %c0_39 = arith.constant 0 : index
    %38 = vector.load %arg7[%c48, %c0_39] : memref<144x512xbf16, #tpu.memory_space<vmem>>, vector<16x256xbf16>
    tpu.vector_store %arg7[%c48, %c0_39], %37 {strides = array<i32>} : memref<144x512xbf16, #tpu.memory_space<vmem>>, vector<16x256xbf16>,
    %c1_40 = arith.constant 1 : index
    %c0_41 = arith.constant 0 : index
    %c127_42 = arith.constant 127 : index
    %39 = vector.load %arg6[%c1_40, %c0_41, %c127_42] : memref<2x16x512xbf16, #tpu.memory_space<vmem>>, vector<1x16x256xbf16>
    %40 = vector.shape_cast %39 : vector<1x16x256xbf16> to vector<16x256xbf16>
    %41 = vector.broadcast %6 : vector<1x256xbf16> to vector<16x256xbf16>
    %42 = arith.mulf %40, %41 : vector<16x256xbf16>
    %c48_43 = arith.constant 48 : index
    %c256_44 = arith.constant 256 : index
    %43 = vector.load %arg7[%c48_43, %c256_44] : memref<144x512xbf16, #tpu.memory_space<vmem>>, vector<16x256xbf16>
    tpu.vector_store %arg7[%c48_43, %c256_44], %42 {strides = array<i32>} : memref<144x512xbf16, #tpu.memory_space<vmem>>, vector<16x256xbf16>,
    %c0_45 = arith.constant 0 : index
    %c0_46 = arith.constant 0 : index
    %c128_47 = arith.constant 128 : index
    %44 = vector.load %arg6[%c0_45, %c0_46, %c128_47] : memref<2x16x512xbf16, #tpu.memory_space<vmem>>, vector<1x16x256xbf16>
    %45 = vector.shape_cast %44 : vector<1x16x256xbf16> to vector<16x256xbf16>
    %c64 = arith.constant 64 : index
    %c0_48 = arith.constant 0 : index
    %46 = vector.load %arg7[%c64, %c0_48] : memref<144x512xbf16, #tpu.memory_space<vmem>>, vector<16x256xbf16>
    tpu.vector_store %arg7[%c64, %c0_48], %45 {strides = array<i32>} : memref<144x512xbf16, #tpu.memory_space<vmem>>, vector<16x256xbf16>,
    %c1_49 = arith.constant 1 : index
    %c0_50 = arith.constant 0 : index
    %c128_51 = arith.constant 128 : index
    %47 = vector.load %arg6[%c1_49, %c0_50, %c128_51] : memref<2x16x512xbf16, #tpu.memory_space<vmem>>, vector<1x16x256xbf16>
    %48 = vector.shape_cast %47 : vector<1x16x256xbf16> to vector<16x256xbf16>
    %c64_52 = arith.constant 64 : index
    %c256_53 = arith.constant 256 : index
    %49 = vector.load %arg7[%c64_52, %c256_53] : memref<144x512xbf16, #tpu.memory_space<vmem>>, vector<16x256xbf16>
    tpu.vector_store %arg7[%c64_52, %c256_53], %48 {strides = array<i32>} : memref<144x512xbf16, #tpu.memory_space<vmem>>, vector<16x256xbf16>,
    %c0_54 = arith.constant 0 : index
    %c0_55 = arith.constant 0 : index
    %c129 = arith.constant 129 : index
    %50 = vector.load %arg6[%c0_54, %c0_55, %c129] : memref<2x16x512xbf16, #tpu.memory_space<vmem>>, vector<1x16x256xbf16>
    %51 = vector.shape_cast %50 : vector<1x16x256xbf16> to vector<16x256xbf16>
    %52 = vector.broadcast %7 : vector<1x256xbf16> to vector<16x256xbf16>
    %53 = arith.mulf %51, %52 : vector<16x256xbf16>
    %c80 = arith.constant 80 : index
    %c0_56 = arith.constant 0 : index
    %54 = vector.load %arg7[%c80, %c0_56] : memref<144x512xbf16, #tpu.memory_space<vmem>>, vector<16x256xbf16>
    tpu.vector_store %arg7[%c80, %c0_56], %53 {strides = array<i32>} : memref<144x512xbf16, #tpu.memory_space<vmem>>, vector<16x256xbf16>,
    %c1_57 = arith.constant 1 : index
    %c0_58 = arith.constant 0 : index
    %c129_59 = arith.constant 129 : index
    %55 = vector.load %arg6[%c1_57, %c0_58, %c129_59] : memref<2x16x512xbf16, #tpu.memory_space<vmem>>, vector<1x16x256xbf16>
    %56 = vector.shape_cast %55 : vector<1x16x256xbf16> to vector<16x256xbf16>
    %57 = vector.broadcast %7 : vector<1x256xbf16> to vector<16x256xbf16>
    %58 = arith.mulf %56, %57 : vector<16x256xbf16>
    %c80_60 = arith.constant 80 : index
    %c256_61 = arith.constant 256 : index
    %59 = vector.load %arg7[%c80_60, %c256_61] : memref<144x512xbf16, #tpu.memory_space<vmem>>, vector<16x256xbf16>
    tpu.vector_store %arg7[%c80_60, %c256_61], %58 {strides = array<i32>} : memref<144x512xbf16, #tpu.memory_space<vmem>>, vector<16x256xbf16>,
    %c0_62 = arith.constant 0 : index
    %c0_63 = arith.constant 0 : index
    %c143 = arith.constant 143 : index
    %60 = vector.load %arg6[%c0_62, %c0_63, %c143] : memref<2x16x512xbf16, #tpu.memory_space<vmem>>, vector<1x16x256xbf16>
    %61 = vector.shape_cast %60 : vector<1x16x256xbf16> to vector<16x256xbf16>
    %62 = vector.broadcast %6 : vector<1x256xbf16> to vector<16x256xbf16>
    %63 = arith.mulf %61, %62 : vector<16x256xbf16>
    %c96 = arith.constant 96 : index
    %c0_64 = arith.constant 0 : index
    %64 = vector.load %arg7[%c96, %c0_64] : memref<144x512xbf16, #tpu.memory_space<vmem>>, vector<16x256xbf16>
    tpu.vector_store %arg7[%c96, %c0_64], %63 {strides = array<i32>} : memref<144x512xbf16, #tpu.memory_space<vmem>>, vector<16x256xbf16>,
    %c1_65 = arith.constant 1 : index
    %c0_66 = arith.constant 0 : index
    %c143_67 = arith.constant 143 : index
    %65 = vector.load %arg6[%c1_65, %c0_66, %c143_67] : memref<2x16x512xbf16, #tpu.memory_space<vmem>>, vector<1x16x256xbf16>
    %66 = vector.shape_cast %65 : vector<1x16x256xbf16> to vector<16x256xbf16>
    %67 = vector.broadcast %6 : vector<1x256xbf16> to vector<16x256xbf16>
    %68 = arith.mulf %66, %67 : vector<16x256xbf16>
    %c96_68 = arith.constant 96 : index
    %c256_69 = arith.constant 256 : index
    %69 = vector.load %arg7[%c96_68, %c256_69] : memref<144x512xbf16, #tpu.memory_space<vmem>>, vector<16x256xbf16>
    tpu.vector_store %arg7[%c96_68, %c256_69], %68 {strides = array<i32>} : memref<144x512xbf16, #tpu.memory_space<vmem>>, vector<16x256xbf16>,
    %c0_70 = arith.constant 0 : index
    %c0_71 = arith.constant 0 : index
    %c144 = arith.constant 144 : index
    %70 = vector.load %arg6[%c0_70, %c0_71, %c144] : memref<2x16x512xbf16, #tpu.memory_space<vmem>>, vector<1x16x256xbf16>
    %71 = vector.shape_cast %70 : vector<1x16x256xbf16> to vector<16x256xbf16>
    %c112_72 = arith.constant 112 : index
    %c0_73 = arith.constant 0 : index
    %72 = vector.load %arg7[%c112_72, %c0_73] : memref<144x512xbf16, #tpu.memory_space<vmem>>, vector<16x256xbf16>
    tpu.vector_store %arg7[%c112_72, %c0_73], %71 {strides = array<i32>} : memref<144x512xbf16, #tpu.memory_space<vmem>>, vector<16x256xbf16>,
    %c1_74 = arith.constant 1 : index
    %c0_75 = arith.constant 0 : index
    %c144_76 = arith.constant 144 : index
    %73 = vector.load %arg6[%c1_74, %c0_75, %c144_76] : memref<2x16x512xbf16, #tpu.memory_space<vmem>>, vector<1x16x256xbf16>
    %74 = vector.shape_cast %73 : vector<1x16x256xbf16> to vector<16x256xbf16>
    %c112_77 = arith.constant 112 : index
    %c256_78 = arith.constant 256 : index
    %75 = vector.load %arg7[%c112_77, %c256_78] : memref<144x512xbf16, #tpu.memory_space<vmem>>, vector<16x256xbf16>
    tpu.vector_store %arg7[%c112_77, %c256_78], %74 {strides = array<i32>} : memref<144x512xbf16, #tpu.memory_space<vmem>>, vector<16x256xbf16>,
    %c0_79 = arith.constant 0 : index
    %c0_80 = arith.constant 0 : index
    %c145 = arith.constant 145 : index
    %76 = vector.load %arg6[%c0_79, %c0_80, %c145] : memref<2x16x512xbf16, #tpu.memory_space<vmem>>, vector<1x16x256xbf16>
    %77 = vector.shape_cast %76 : vector<1x16x256xbf16> to vector<16x256xbf16>
    %78 = vector.broadcast %7 : vector<1x256xbf16> to vector<16x256xbf16>
    %79 = arith.mulf %77, %78 : vector<16x256xbf16>
    %c128_81 = arith.constant 128 : index
    %c0_82 = arith.constant 0 : index
    %80 = vector.load %arg7[%c128_81, %c0_82] : memref<144x512xbf16, #tpu.memory_space<vmem>>, vector<16x256xbf16>
    tpu.vector_store %arg7[%c128_81, %c0_82], %79 {strides = array<i32>} : memref<144x512xbf16, #tpu.memory_space<vmem>>, vector<16x256xbf16>,
    %c1_83 = arith.constant 1 : index
    %c0_84 = arith.constant 0 : index
    %c145_85 = arith.constant 145 : index
    %81 = vector.load %arg6[%c1_83, %c0_84, %c145_85] : memref<2x16x512xbf16, #tpu.memory_space<vmem>>, vector<1x16x256xbf16>
    %82 = vector.shape_cast %81 : vector<1x16x256xbf16> to vector<16x256xbf16>
    %83 = vector.broadcast %7 : vector<1x256xbf16> to vector<16x256xbf16>
    %84 = arith.mulf %82, %83 : vector<16x256xbf16>
    %c128_86 = arith.constant 128 : index
    %c256_87 = arith.constant 256 : index
    %85 = vector.load %arg7[%c128_86, %c256_87] : memref<144x512xbf16, #tpu.memory_space<vmem>>, vector<16x256xbf16>
    tpu.vector_store %arg7[%c128_86, %c256_87], %84 {strides = array<i32>} : memref<144x512xbf16, #tpu.memory_space<vmem>>, vector<16x256xbf16>,
    %c0_88 = arith.constant 0 : index
    %c0_89 = arith.constant 0 : index
    %86 = vector.load %arg2[%c0_88, %c0_89] : memref<8x144xbf16, #tpu.memory_space<vmem>>, vector<8x144xbf16>
    %c0_90 = arith.constant 0 : index
    %c0_91 = arith.constant 0 : index
    %87 = vector.load %arg7[%c0_90, %c0_91] : memref<144x512xbf16, #tpu.memory_space<vmem>>, vector<144x512xbf16>
    %cst_92 = arith.constant dense<0.000000e+00> : vector<8x512xf32>
    %88 = tpu.matmul %86, %87, %cst_92 {dimension_numbers = #tpu.dot_dimension_numbers<[1], [0], [0], [1], [0, 0, 1, 1], [], []>} : vector<8x144xbf16>, vector<144x512xbf16>, vector<8x512xf32> -> vector<8x512xf32>
    %89 = vector.extract_strided_slice %88 {offsets = [0, 0], sizes = [8, 256], strides = [1, 1]} : vector<8x512xf32> to vector<8x256xf32>
    %90 = arith.truncf %89 : vector<8x256xf32> to vector<8x256xbf16>
    %c0_93 = arith.constant 0 : index
    %c0_94 = arith.constant 0 : index
    %c0_95 = arith.constant 0 : index
    %91 = vector.load %arg4[%c0_93, %c0_94, %c0_95] : memref<2x8x256xbf16, #tpu.memory_space<vmem>>, vector<1x8x256xbf16>
    %92 = vector.shape_cast %91 : vector<1x8x256xbf16> to vector<8x256xbf16>
    %93 = vector.shape_cast %90 : vector<8x256xbf16> to vector<1x8x256xbf16>
    tpu.vector_store %arg4[%c0_93, %c0_94, %c0_95], %93 {strides = array<i32>} : memref<2x8x256xbf16, #tpu.memory_space<vmem>>, vector<1x8x256xbf16>,
    %cst_96 = arith.constant dense<0.000000e+00> : vector<8xf32>
    %94 = vector.multi_reduction <add>, %89, %cst_96 [1] : vector<8x256xf32> to vector<8xf32>
    %95 = vector.shape_cast %94 : vector<8xf32> to vector<8x1xf32>
    %96 = arith.mulf %89, %89 : vector<8x256xf32>
    %cst_97 = arith.constant dense<0.000000e+00> : vector<8xf32>
    %97 = vector.multi_reduction <add>, %96, %cst_97 [1] : vector<8x256xf32> to vector<8xf32>
    %98 = vector.shape_cast %97 : vector<8xf32> to vector<8x1xf32>
    %99 = vector.extract_strided_slice %88 {offsets = [0, 256], sizes = [8, 256], strides = [1, 1]} : vector<8x512xf32> to vector<8x256xf32>
    %100 = arith.truncf %99 : vector<8x256xf32> to vector<8x256xbf16>
    %c1_98 = arith.constant 1 : index
    %c0_99 = arith.constant 0 : index
    %c0_100 = arith.constant 0 : index
    %101 = vector.load %arg4[%c1_98, %c0_99, %c0_100] : memref<2x8x256xbf16, #tpu.memory_space<vmem>>, vector<1x8x256xbf16>
    %102 = vector.shape_cast %101 : vector<1x8x256xbf16> to vector<8x256xbf16>
    %103 = vector.shape_cast %100 : vector<8x256xbf16> to vector<1x8x256xbf16>
    tpu.vector_store %arg4[%c1_98, %c0_99, %c0_100], %103 {strides = array<i32>} : memref<2x8x256xbf16, #tpu.memory_space<vmem>>, vector<1x8x256xbf16>,
    %cst_101 = arith.constant dense<0.000000e+00> : vector<8xf32>
    %104 = vector.multi_reduction <add>, %99, %cst_101 [1] : vector<8x256xf32> to vector<8xf32>
    %105 = vector.shape_cast %104 : vector<8xf32> to vector<8x1xf32>
    %106 = arith.mulf %99, %99 : vector<8x256xf32>
    %cst_102 = arith.constant dense<0.000000e+00> : vector<8xf32>
    %107 = vector.multi_reduction <add>, %106, %cst_102 [1] : vector<8x256xf32> to vector<8xf32>
    %108 = vector.shape_cast %107 : vector<8xf32> to vector<8x1xf32>
    %109 = tpu.concatenate %95, %105, %98, %108 in 1 : vector<8x1xf32>, vector<8x1xf32>, vector<8x1xf32>, vector<8x1xf32> -> vector<8x4xf32>
    %c0_103 = arith.constant 0 : index
    %c0_104 = arith.constant 0 : index
    %c0_105 = arith.constant 0 : index
    %110 = vector.load %arg5[%c0_103, %c0_104, %c0_105] : memref<1x8x4xf32, #tpu.memory_space<vmem>>, vector<1x8x4xf32>
    %111 = vector.shape_cast %110 : vector<1x8x4xf32> to vector<8x4xf32>
    %112 = vector.shape_cast %109 : vector<8x4xf32> to vector<1x8x4xf32>
    tpu.vector_store %arg5[%c0_103, %c0_104, %c0_105], %112 {strides = array<i32>} : memref<1x8x4xf32, #tpu.memory_space<vmem>>, vector<1x8x4xf32>,
    return
  }
  func.func @transform_0(%arg0: i32) -> (i32, i32, i32) {
    %c0_i32 = arith.constant 0 : i32
    %c0_i32_0 = arith.constant 0 : i32
    %c0_i32_1 = arith.constant 0 : i32
    return %arg0, %c0_i32, %c0_i32_0 : i32, i32, i32
  }
  func.func @transform_1(%arg0: i32) -> (i32, i32) {
    %c0_i32 = arith.constant 0 : i32
    %c0_i32_0 = arith.constant 0 : i32
    %c0_i32_1 = arith.constant 0 : i32
    return %c0_i32, %c0_i32_0 : i32, i32
  }
  func.func @transform_2(%arg0: i32) -> (i32, i32) {
    %c0_i32 = arith.constant 0 : i32
    %c0_i32_0 = arith.constant 0 : i32
    %c0_i32_1 = arith.constant 0 : i32
    return %c0_i32, %c0_i32_0 : i32, i32
  }
  func.func @transform_3(%arg0: i32) -> (i32, i32, i32) {
    %c0_i32 = arith.constant 0 : i32
    %c0_i32_0 = arith.constant 0 : i32
    %c0_i32_1 = arith.constant 0 : i32
    return %arg0, %c0_i32, %c0_i32_0 : i32, i32, i32
  }
  func.func @transform_4(%arg0: i32) -> (i32, i32, i32) {
    %c0_i32 = arith.constant 0 : i32
    %c0_i32_0 = arith.constant 0 : i32
    %c0_i32_1 = arith.constant 0 : i32
    return %arg0, %c0_i32, %c0_i32_0 : i32, i32, i32
  }
}

</mosaic_0001>

<bundles_post_ra>
// kernel: tpu_custom_call.1
= control target key start
LH: loop header
LB: loop body
LE: loop exit
PB: predicated region body
PF: predicated region fallthrough
CT: control target
= control target key end

     0   :  { %10 = vsyncpa [#allocation5], 0  ;;  %s1674_s0 = inlined_call_operand.hbm [shape: bf16[4,16,256], index: 0, kind: input, shape index: {}]   ;;  %s1675_s1 = inlined_call_operand.hbm [shape: bf16[8,144], index: 1, kind: input, shape index: {}]   ;;  %s1676_s2 = inlined_call_operand.vmem [shape: bf16[3,256], index: 2, kind: input, shape index: {}]   ;;  %s1677_s3 = inlined_call_operand.hbm [shape: bf16[4,8,256], index: 3, kind: output, shape index: {0}]   ;;  %s1678_s4 = inlined_call_operand.vmem [shape: f32[2,8,4], index: 4, kind: output, shape index: {1}]  }
   0x1   :  { %12 = vsyncpa [#allocation5 + $0x1], 0 }
   0x2   :  { %13 = vsyncpa [#allocation8], 0 }
   0x3   :  { %14 = vsyncpa [#allocation6], 0 }
   0x4   :  { %16 = vsyncpa [#allocation6 + $0x1], 0  ;;  %s1304_s15 = smov 0   ;;  %s1306_s16 = smov 0  }
   0x5   :  { %s1308_s17 = smov 0   ;;  %s1310_s18 = smov 0  }
   0x6 LB: > { %s1325_s19 = sadd.s32 4294967295, %s1261_s18   ;;  %s1008_s20 = sadd.s32 4294967294, %s1261_s18   ;;  %s1261_s18 = sphi %s1310_s18, %s1703_s18   ;;  %s1257_s17 = sphi %s1308_s17, %s1702_s17   ;;  %s1253_s16 = sphi %s1306_s16, %s1701_s16   ;;  %s1249_s15 = sphi %s1304_s15, %s1700_s15  }
   0x7   : > { %s1329_s21 = sadd.s32 1, %s1261_s18   ;;  %s29_s22 = sadd.s32 1, %s1257_s17 }
   0x8   : > { %s26_s23 = ssub.s32 %s1261_s18, %s1329_s21  ;;  %p36_p0 = scmp.ne.s32.totalorder %s1257_s17, %s1253_s16 }
   0x9   : > { %p27_p1 = scmp.eq.s32.totalorder %s26_s23, 0  ;;  %p37_p2 = scmp.eq.s32.totalorder %s1261_s18, 0 }
   0xa   : > { %p42_p3 = scmp.ne.s32.totalorder %s1253_s16, %s1249_s15  ;;  %p1679_p4 = scmp.eq.s32.totalorder %s1325_s19, 0 }
   0xb   : > { %s1341_s24 = scalar_select %p27_p1, %s1257_s17, %s29_s22  }
   0xc   : > { %p1343_p5 = por %p37_p2, %p36_p0  ;;  %p1349_p6 = por %p1679_p4, %p42_p3 }
   0xd   : > { %p108_p7 = scmp.eq.s32.totalorder %s1325_s19, 1  ;;  %p114_p8 = scmp.eq.s32.totalorder %s1008_s20, 1 }
   0xe   : > { %s1685_s26 = scalar_select %p1349_p6, 1, 0 }
   0xf   : > { %p1009_p9 = scmp.ge.s32.totalorder %s1261_s18, 1  ;;  %p147_p10 = scmp.lt.s32.totalorder %s1261_s18, 3 }
  0x10   : > { %p1356_p11 = por %p108_p7, %p36_p0  ;;  %p1360_p12 = por %p114_p8, %p42_p3 }
  0x11   : > { %p1364_p13 = pnand %p1009_p9, %p147_p10  ;;  %s1263_s30 = smov [#allocation7]  }
  0x12   : > { %s1686_s27 = scalar_select %p1356_p11, 1, 0 }
  0x13   : > { %s1687_s28 = scalar_select %p1360_p12, 1, 0 }
  0x14   : > { %s1688_s29 = scalar_select %p1364_p13, 1, 0 }
  0x15   : > { %p1053_p2 = pneg %p1364_p13  ;;  %s160_s5 = sshll.u32 %s1263_s30, 4  ;;  %s161_s5 = int_to_ptr.vmem [resolvable:$true] %s160_s5 }
  0x16   : > { %p1066_p4 = scmp.lt.s32.totalorder %s1261_s18, 2  ;;  %p1689_p0 = scmp.eq.s32.totalorder %s1325_s19, 0 }
  0x17   : > { %s174_s7 = sand.u32 1, %s1257_s17   ;;  %s1133_s12 = scalar_lea.hbm %s1675_s1, 128 }
  0x18   : > { %p1374_p7 = pnand %p1053_p2, %p1689_p0  ;;  %p1381_p3 = pnand %p1066_p4, %p1343_p5 }
  0x19   : > { %s1012_s9 = sshll.u32 %s174_s7, 5  ;;  %p1134_p8 = scmp.ne.s32.totalorder %s1675_s1, %s1133_s12 }
  0x1a   : > { %s1691_s8 = scalar_select %p1381_p3, 1, 0 }
  0x1b   : > { %p1135_p9 = pneg %p1374_p7  ;;  %p1140_p4 = scmp.lt.u32.totalorder %s1133_s12, %s1675_s1 }
  0x1d   : > { %p1136_p10 = pnand %p1135_p9, %p1134_p8 }
  0x1f   : > { %p1137_p2 = pneg %p1136_p10 }
  0x21   : > { %p1142_p5 = pnand %p1140_p4, %p1137_p2 }
  0x23   : > { %1145 = shalt.err (!%p1142_p5)
}
  0x24   : > { %s1146_s23 = scalar_lea.vmem %s161_s5, 128  ;;  %p1154_p11 = scmp.lt.s32.totalorder %s161_s5, %s161_s5 }
  0x25   : > { %p1147_p0 = scmp.ne.s32.totalorder %s161_s5, %s1146_s23  ;;  %p1155_p6 = scmp.lt.s32.totalorder %s1146_s23, %s1146_s23 }
  0x27   : > { %p1149_p1 = pnand %p1147_p0, %p1135_p9  ;;  %p1156_p13 = por %p1155_p6, %p1154_p11 }
  0x29   : > { %p1150_p12 = pneg %p1149_p1 }
  0x2b   : > { %p1157_p3 = pnand %p1156_p13, %p1150_p12 }
  0x2d   : > { %1160 = shalt.err (!%p1157_p3)
}
  0x2e   : > { %1056 = dma.hbm_to_vmem [thread:$0]  (!%p1374_p7), %s1675_s1, 128, %s161_s5, [#allocation8]  }
  0x2f   : > { %s1040_s10 = sshll.u32 %s1261_s18, 9  ;;  %s178_s11 = scalar_lea.vmem [#allocation4], %s1012_s9 }
  0x30   : > { %s186_s12 = sshll.u32 %s178_s11, 4  ;;  %s1405_s20 = scalar_lea.hbm %s1674_s0, %s1040_s10  ;;  %s1407_s12 = int_to_ptr.vmem [resolvable:$true] %s186_s12 }
  0x31   : > { %s1409_s6 = scalar_lea.sflag [#allocation5], %s174_s7  ;;  %s1161_s22 = scalar_lea.hbm %s1405_s20, 512 }
  0x32   : > { %p1162_p6 = scmp.ne.s32.totalorder %s1405_s20, %s1161_s22  ;;  %p1692_p11 = scmp.ne.s32.totalorder %s1691_s8, 0 }
  0x33   : > { %s1166_s23 = scalar_lea.hbm %s1674_s0, 1024  ;;  %p1167_p7 = scmp.lt.u32.totalorder %s1405_s20, %s1674_s0 }
  0x34   : > { %p1163_p12 = pneg %p1692_p11  ;;  %p1168_p3 = scmp.lt.u32.totalorder %s1166_s23, %s1161_s22 }
  0x35   : > { %p1170_p9 = scmp.lt.u32.totalorder %s1161_s22, %s1405_s20 }
  0x36   : > { %p1164_p13 = pnand %p1163_p12, %p1162_p6  ;;  %p1169_p8 = por %p1168_p3, %p1167_p7 }
  0x38   : > { %p1165_p1 = pneg %p1164_p13  ;;  %p1171_p10 = por %p1170_p9, %p1169_p8 }
  0x3a   : > { %p1172_p2 = pnand %p1171_p10, %p1165_p1 }
  0x3c   : > { %1175 = shalt.err (!%p1172_p2)
}
  0x3d   : > { %s1176_s7 = scalar_lea.vmem %s1407_s12, 512  ;;  %s1264_s10 = smov [#allocation4]  }
  0x3e   : > { %p1177_p4 = scmp.ne.s32.totalorder %s1407_s12, %s1176_s7  ;;  %s1181_s11 = sshll.u32 %s1264_s10, 4  ;;  %s1182_s11 = int_to_ptr.vmem [resolvable:$false] %s1181_s11 }
  0x3f   : > { %s1183_s13 = scalar_lea.vmem %s1182_s11, 1024  ;;  %p1184_p6 = scmp.lt.s32.totalorder %s1407_s12, %s1182_s11 }
  0x40   : > { %p1179_p5 = pnand %p1177_p4, %p1163_p12  ;;  %p1185_p13 = scmp.lt.s32.totalorder %s1183_s13, %s1176_s7 }
  0x42   : > { %p1180_p0 = pneg %p1179_p5  ;;  %p1186_p7 = por %p1185_p13, %p1184_p6 }
  0x44   : > { %p1187_p3 = pnand %p1186_p7, %p1180_p0 }
  0x46   : > { %1190 = shalt.err (!%p1187_p3)
}
  0x47   : > { %s1265_s14 = smov 128   ;;  %s1266_s22 = smov 8  }
  0x48   : > { %1060 = dma.hbm_to_vmem [thread:$0]  (!%p1692_p11), %s1405_s20, 512, %s1407_s12, %s1409_s6, %s1265_s14, %s1265_s14, %s1266_s22  }
  0x49   : > { %p1693_p12 = scmp.ne.s32.totalorder %s1688_s29, 0 }
  0x4a   : > { %s1440_s5 = sand.u32 (!%p1693_p12), 1, %s1253_s16   ;;  %p1694_p1 = scmp.ne.s32.totalorder (!%p1693_p12), %s1685_s26, 0 }
  0x4b   : > { %198 = sbr.rel (%p1693_p12) target bundleno = 782 (0x30e), region = 32  ;;  %s1017_s9 = sshll.u32 (!%p1693_p12), %s1440_s5, 5 }
  0x4c   : > { %s201_s23 = scalar_lea.sflag (!%p1693_p12), [#allocation5], %s1440_s5  ;;  %s1444_s25 = scalar_lea.vmem (!%p1693_p12), [#allocation4], %s1017_s9 }
  0x52   : > { %1236 = dma.done.wait (%p1694_p1), %s201_s23, 512  }
  0x53   : > { %1238 = vsyncadd (%p1694_p1), %s201_s23, 4294966784  ;;  %p1695_p11 = scmp.eq.s32.totalorder %s1325_s19, 0 }
  0x55   : > { %1240 = dma.done.wait (%p1695_p11), [#allocation8], 128   ;;  %p1696_p8 = pmov %p1695_p11 }
  0x56   : > { %v292_v0 = vlaneseq  ;;  %v1025_v3 = vld.sshfl [vmem:[%s1676_s2] sm:$0x11 pattern:$0x76325410]  ;;  %s1267_s26 = smov 111   ;;  %s1268_s12 = smov 113  }
  0x57   : > { %1242 = vsyncadd (%p1696_p8), [#allocation8], 4294967168  ;;  %v290_v4 = vpack.i.b16 %v1025_v3, %v1025_v3  ;;  %v395_v5 = vshrl.u32 %v1025_v3, 16  ;;  %v288_v6 = vcombine.high %v1025_v3, %v1025_v3  ;;  %s1269_s20 = smov 127   ;;  %s1270_s6 = smov 15   ;;  %v1274_v18 = vmov 0  }
  0x58   : > { %v293_v1 = vshrl.u32 %v292_v0, 7  ;;  %s1271_s30 = smov 1   ;;  %s1272_s7 = smov 17   ;;  %v1469_v15 = vld [vmem:[%s1444_s25] ss:$8 sps:$4 sm:$0xff]   ;;  %vm309_vm0 = vcmask 908288  }
  0x59   : > { %v396_v8 = vpack.i.b16 %v395_v5, %v395_v5  ;;  %v297_v9 = vpack.i.b16 %v288_v6, %v288_v6  ;;  %v402_v12 = vshrl.u32 %v288_v6, 16  ;;  %v1473_v16 = vld [vmem:[%s1444_s25 + $0x4] ss:$8 sps:$4 sm:$0xff]   ;;  %s1273_s10 = smov 16   ;;  %v1478_v17 = vld [vmem:[%s1444_s25 + $0x10] ss:$8 sps:$4 sm:$0xff]  }
  0x5a   : > { %v294_v2 = vsub.s32 0, %v293_v1  ;;  %v1482_v19 = vld [vmem:[%s1444_s25 + $0x14] ss:$8 sps:$4 sm:$0xff]   ;;  %vm467_vm1 = vcmask 1039360   ;;  %vm432_vm2 = vcmask 121856   ;;  %vm415_vm3 = vcmask 924672  }
  0x5b   : > { %v403_v13 = vpack.i.b16 %v402_v12, %v402_v12  ;;  %vm484_vm4 = vcmask 7168   ;;  %s1275_s11 = smov 112   ;;  %vm326_vm5 = vcmask 138240   ;;  %v1551_v63 = vld [vmem:[#allocation7] sm:$0xff]  ;;  %vm367_vm6 = vcmask 130048   ;;  %s1019_s13 = sshll.u32 %s1440_s5, 4 }
  0x5c   : > { %v295_v7 = vrot.slane %v290_v4, %v294_v2  ;;  %v401_v10 = vrot.slane %v396_v8, %v294_v2  ;;  %v302_v11 = vrot.slane %v297_v9, %v294_v2  ;;  %v1027_v1 = vcombine.high %v1551_v63, %v1551_v63  ;;  %s230_s14 = scalar_lea.vmem [#allocation9], %s1019_s13  ;;  %s1044_s9 = sshll.u32 %s1325_s19, 8 }
  0x5d   : > { %v408_v14 = vrot.slane %v403_v13, %v294_v2  ;;  %vm632_vm7 = vcmask 916480   ;;  %s898_s22 = sshll.u32 %s230_s14, 4  ;;  %s1624_s29 = scalar_lea.hbm %s1677_s3, %s1044_s9  ;;  %s1619_s22 = int_to_ptr.vmem [resolvable:$true] %s898_s22 }
  0x5e   : > { %305 = vrot.lane.b32.xlu0 %v295_v7, %s1267_s26  ;;  %411 = vrot.lane.b32.xlu1 %v401_v10, %s1268_s12  ;;  %s880_s8 = scalar_lea.sflag [#allocation6], %s1440_s5  ;;  %p1697_p10 = scmp.ne.s32.totalorder %s1686_s27, 0 }
  0x5f   : > { %1028 = vmatprep.mubr.msk.bf16.mxu0 %vm367_vm6, %v1027_v1  ;;  %1029 = vmatprep.mubr.msk.bf16.mxu1 %vm367_vm6, %v1027_v1 }
  0x62   : > { %463 = vrot.lane.b32.xlu0 %v295_v7, %s1269_s20  ;;  %465 = vrot.lane.b32.xlu1 %v302_v11, %s1269_s20 }
  0x66   : > { %307 = vrot.lane.b32.xlu0 %v302_v11, %s1267_s26  ;;  %575 = vrot.lane.b32.xlu1 %v302_v11, %s1270_s6 }
  0x6a   : > { %523 = vrot.lane.b32.xlu0 %v401_v10, %s1271_s30  ;;  %413 = vrot.lane.b32.xlu1 %v408_v14, %s1268_s12 }
  0x6e   : > { %573 = vrot.lane.b32.xlu0 %v295_v7, %s1270_s6  ;;  %525 = vrot.lane.b32.xlu1 %v408_v14, %s1271_s30 }
  0x72   : > { %660 = vrot.lane.b32.xlu0 %v401_v10, %s1272_s7  ;;  %662 = vrot.lane.b32.xlu1 %v408_v14, %s1272_s7 }
  0x76   : > { %363 = vrot.lane.b32.xlu0 %v1469_v15, %s1273_s10  ;;  %365 = vrot.lane.b32.xlu1 %v1473_v16, %s1273_s10 }
  0x7a   : > { %1116 = vrot.lane.b32.xlu0 %v1274_v18, %s1273_s10  ;;  %382 = vrot.lane.b32.xlu1 %v1478_v17, %s1273_s10 }
  0x7e   : > { %384 = vrot.lane.b32.xlu0 %v1482_v19, %s1273_s10 }
  0xd0   : > { %v306_v20 = vpop.permute.xlu0 %305  ;;  %v412_v29 = vpop.permute.xlu1 %411 }
  0xd1   : > { %v314_v21 = vmul.bf16 0, %v306_v20  ;;  %v420_v32 = vmul.bf16 0, %v412_v29 }
  0xd3   : > { %343 = vrot.lane.b32.xlu1 %v314_v21, %s1272_s7  ;;  %320 = vrot.lane.b32.xlu0 %v314_v21, %s1272_s7 }
  0xd4   : > { %v464_v22 = vpop.permute.xlu0 %463  ;;  %v466_v33 = vpop.permute.xlu1 %465 }
  0xd5   : > { %v472_v23 = vmul.bf16 0, %v464_v22  ;;  %v474_v34 = vmul.bf16 %v1473_v16, %v466_v33  ;;  %v496_v35 = vmul.bf16 %v1482_v19, %v466_v33  ;;  %v468_v43 = vsel %vm467_vm1, %v464_v22, %v466_v33 }
  0xd6   : > { %v473_v44 = vmul.bf16 %v1469_v15, %v468_v43  ;;  %v495_v45 = vmul.bf16 %v1478_v17, %v468_v43 }
  0xd7   : > { %478 = vrot.lane.b32.xlu1 %v472_v23, %s1271_s30  ;;  %500 = vrot.lane.b32.xlu0 %v472_v23, %s1271_s30 }
  0xd8   : > { %v308_v24 = vpop.permute.xlu0 %307  ;;  %v576_v38 = vpop.permute.xlu1 %575 }
  0xd9   : > { %v316_v30 = vmul.bf16 %v1473_v16, %v308_v24  ;;  %v339_v31 = vmul.bf16 %v1482_v19, %v308_v24  ;;  %v583_v39 = vmul.bf16 0, %v576_v38  ;;  %v310_v40 = vsel %vm309_vm0, %v306_v20, %v308_v24 }
  0xda   : > { %v338_v41 = vmul.bf16 %v1478_v17, %v310_v40  ;;  %v315_v42 = vmul.bf16 %v1469_v15, %v310_v40 }
  0xdc   : > { %v1490_v25 = vpop.permute.xlu0 %523  ;;  %v414_v47 = vpop.permute.xlu1 %413 }
  0xdd   : > { %v531_v36 = vmul.bf16 %v1469_v15, %v1490_v25  ;;  %v552_v37 = vmul.bf16 %v1478_v17, %v1490_v25  ;;  %v422_v50 = vmul.bf16 %v1473_v16, %v414_v47  ;;  %v444_v51 = vmul.bf16 %v1482_v19, %v414_v47 }
  0xde   : > { %v416_v54 = vsel %vm415_vm3, %v412_v29, %v414_v47 }
  0xdf   : > { %v421_v55 = vmul.bf16 %v1469_v15, %v416_v54  ;;  %v443_v56 = vmul.bf16 %v1478_v17, %v416_v54 }
  0xe0   : > { %v574_v26 = vpop.permute.xlu0 %573  ;;  %v526_v52 = vpop.permute.xlu1 %525 }
  0xe1   : > { %v581_v27 = vmul.bf16 %v1469_v15, %v574_v26  ;;  %v602_v28 = vmul.bf16 %v1478_v17, %v574_v26  ;;  %v577_v46 = vsel %vm432_vm2, %v574_v26, %v576_v38  ;;  %v533_v53 = vmul.bf16 0, %v526_v52 }
  0xe2   : > { %v582_v48 = vmul.bf16 %v1473_v16, %v577_v46  ;;  %v603_v49 = vmul.bf16 %v1482_v19, %v577_v46  ;;  %v527_v57 = vsel %vm484_vm4, %v1490_v25, %v526_v52 }
  0xe3   : > { %608 = vrot.lane.b32.xlu0 %v602_v28, %s1268_s12  ;;  %587 = vrot.lane.b32.xlu1 %v581_v27, %s1268_s12  ;;  %v532_v59 = vmul.bf16 %v1473_v16, %v527_v57  ;;  %v553_v60 = vmul.bf16 %v1482_v19, %v527_v57 }
  0xe4   : > { %v661_v58 = vpop.permute.xlu0 %660  ;;  %v663_v61 = vpop.permute.xlu1 %662 }
  0xe5   : > { %v668_v62 = vmul.bf16 %v1469_v15, %v661_v58  ;;  %v664_v0 = vsel %vm326_vm5, %v661_v58, %v663_v61  ;;  %v670_v3 = vmul.bf16 0, %v663_v61  ;;  %v689_v5 = vmul.bf16 %v1478_v17, %v661_v58 }
  0xe6   : > { %v669_v2 = vmul.bf16 %v1473_v16, %v664_v0  ;;  %v690_v4 = vmul.bf16 %v1482_v19, %v664_v0 }
  0xe7   : > { %347 = vrot.lane.b32.xlu0 %v339_v31, %s1272_s7  ;;  %324 = vrot.lane.b32.xlu1 %v316_v30, %s1272_s7 }
  0xe8   : > { %v364_v6 = vpop.permute.xlu0 %363  ;;  %v366_v7 = vpop.permute.xlu1 %365 }
  0xe9   : > { %v369_v40 = vsel %vm367_vm6, %v364_v6, %v366_v7 }
  0xeb   : > { %448 = vrot.lane.b32.xlu0 %v420_v32, %s1270_s6  ;;  %426 = vrot.lane.b32.xlu1 %v420_v32, %s1270_s6 }
  0xec   : > { %v1117_v8 = vpop.permute.xlu0 %1116  ;;  %v383_v9 = vpop.permute.xlu1 %382 }
  0xed   : > { %v1118_v38 = vunpack.i.l.bf16 %v1117_v8 }
  0xef   : > { %482 = vrot.lane.b32.xlu0 %v474_v34, %s1271_s30  ;;  %504 = vrot.lane.b32.xlu1 %v496_v35, %s1271_s30  ;;  %v368_v43 = vsel %vm367_vm6, %v1118_v38, %v364_v6 }
  0xf0   : > { %v385_v10 = vpop.permute.xlu0 %384 }
  0xf3   : > { %558 = vrot.lane.b32.xlu0 %v552_v37, %s1269_s20  ;;  %537 = vrot.lane.b32.xlu1 %v531_v36, %s1269_s20  ;;  %v1119_v37 = vunpack.i.h.bf16 %v1117_v8 }
  0xf7   : > { %591 = vrot.lane.b32.xlu0 %v583_v39, %s1268_s12  ;;  %612 = vrot.lane.b32.xlu1 %v583_v39, %s1268_s12  ;;  %v387_v39 = vsel %vm367_vm6, %v383_v9, %v385_v10 }
  0xfb   : > { %345 = vrot.lane.b32.xlu1 %v338_v41, %s1272_s7  ;;  %322 = vrot.lane.b32.xlu0 %v315_v42, %s1272_s7 }
  0xff   : > { %480 = vrot.lane.b32.xlu1 %v473_v44, %s1271_s30  ;;  %502 = vrot.lane.b32.xlu0 %v495_v45, %s1271_s30  ;;  %v386_v44 = vsel %vm367_vm6, %v1119_v37, %v383_v9 }
 0x103   : > { %589 = vrot.lane.b32.xlu1 %v582_v48, %s1268_s12  ;;  %610 = vrot.lane.b32.xlu0 %v603_v49, %s1268_s12  ;;  %s1276_s12 = smov [#allocation9]  }
 0x107   : > { %452 = vrot.lane.b32.xlu1 %v444_v51, %s1270_s6  ;;  %430 = vrot.lane.b32.xlu0 %v422_v50, %s1270_s6 }
 0x10b   : > { %562 = vrot.lane.b32.xlu1 %v533_v53, %s1269_s20  ;;  %541 = vrot.lane.b32.xlu0 %v533_v53, %s1269_s20 }
 0x10f   : > { %428 = vrot.lane.b32.xlu1 %v421_v55, %s1270_s6  ;;  %450 = vrot.lane.b32.xlu0 %v443_v56, %s1270_s6 }
 0x113   : > { %628 = vrot.lane.b32.xlu1 %v1473_v16, %s1275_s11  ;;  %1121 = vrot.lane.b32.xlu0 %v1274_v18, %s1275_s11 }
 0x117   : > { %626 = vrot.lane.b32.xlu1 %v1469_v15, %s1275_s11  ;;  %647 = vrot.lane.b32.xlu0 %v1482_v19, %s1275_s11 }
 0x11b   : > { %539 = vrot.lane.b32.xlu1 %v532_v59, %s1269_s20  ;;  %560 = vrot.lane.b32.xlu0 %v553_v60, %s1269_s20  ;;  %s1195_s20 = sshll.u32 %s1276_s12, 4  ;;  %s1196_s20 = int_to_ptr.vmem [resolvable:$false] %s1195_s20 }
 0x11c   : > { %s1197_s6 = scalar_lea.vmem %s1196_s20, 512  ;;  %p1198_p5 = scmp.lt.s32.totalorder %s1619_s22, %s1196_s20 }
 0x11f   : > { %645 = vrot.lane.b32.xlu1 %v1478_v17, %s1275_s11  ;;  %674 = vrot.lane.b32.xlu0 %v668_v62, %s1267_s26 }
 0x123   : > { %678 = vrot.lane.b32.xlu1 %v670_v3, %s1267_s26  ;;  %676 = vrot.lane.b32.xlu0 %v669_v2, %s1267_s26 }
 0x127   : > { %697 = vrot.lane.b32.xlu1 %v690_v4, %s1267_s26  ;;  %699 = vrot.lane.b32.xlu0 %v670_v3, %s1267_s26 }
 0x12b   : > { %695 = vrot.lane.b32.xlu1 %v689_v5, %s1267_s26  ;;  %s1191_s26 = scalar_lea.vmem %s1619_s22, 256 }
 0x12c   : > { %p1192_p9 = scmp.ne.s32.totalorder %s1619_s22, %s1191_s26  ;;  %p1199_p0 = scmp.lt.s32.totalorder %s1197_s6, %s1191_s26 }
 0x12e   : > { %p1193_p2 = pnand %p1192_p9, %p1697_p10  ;;  %p1200_p6 = por %p1199_p0, %p1198_p5 }
 0x130   : > { %p1194_p4 = pneg %p1193_p2 }
 0x132   : > { %p1201_p13 = pnand %p1200_p6, %p1194_p4 }
 0x145   : > { %v344_v11 = vpop.permute.xlu1 %343  ;;  %v321_v12 = vpop.permute.xlu0 %320 }
 0x149   : > { %v479_v13 = vpop.permute.xlu1 %478  ;;  %v501_v14 = vpop.permute.xlu0 %500 }
 0x155   : > { %v1568_v18 = vpop.permute.xlu0 %608  ;;  %v1570_v20 = vpop.permute.xlu1 %587 }
 0x159   : > { %v348_v21 = vpop.permute.xlu0 %347  ;;  %v325_v22 = vpop.permute.xlu1 %324 }
 0x15d   : > { %v449_v23 = vpop.permute.xlu0 %448  ;;  %v427_v24 = vpop.permute.xlu1 %426 }
 0x161   : > { %v483_v25 = vpop.permute.xlu0 %482  ;;  %v505_v26 = vpop.permute.xlu1 %504 }
 0x165   : > { %v1572_v27 = vpop.permute.xlu0 %558  ;;  %v538_v28 = vpop.permute.xlu1 %537 }
 0x169   : > { %v1574_v29 = vpop.permute.xlu0 %591  ;;  %v1576_v30 = vpop.permute.xlu1 %612 }
 0x16d   : > { %v346_v31 = vpop.permute.xlu1 %345  ;;  %v323_v32 = vpop.permute.xlu0 %322 }
 0x16e   : > { %v328_v33 = vsel %vm326_vm5, %v323_v32, %v325_v22  ;;  %v350_v34 = vsel %vm326_vm5, %v346_v31, %v348_v21  ;;  %v327_v35 = vsel %vm326_vm5, %v321_v12, %v323_v32  ;;  %v349_v36 = vsel %vm326_vm5, %v344_v11, %v346_v31 }
 0x16f   : > { %754 = vmatprep.subr.bf16.mxu0 %v328_v33  ;;  %795 = vmatprep.subr.bf16.mxu1 %v350_v34 }
 0x170   : > { %755 = vmatpush1.bf16.msra.mxu0 %v327_v35  ;;  %796 = vmatpush1.bf16.msra.mxu1 %v349_v36 }
 0x171   : > { %797 = vmatprep.subr.bf16.mxu1 %v387_v39  ;;  %v481_v41 = vpop.permute.xlu1 %480  ;;  %756 = vmatprep.subr.bf16.mxu0 %v369_v40  ;;  %v503_v42 = vpop.permute.xlu0 %502 }
 0x172   : > { %v486_v57 = vsel %vm484_vm4, %v481_v41, %v483_v25  ;;  %v507_v58 = vsel %vm484_vm4, %v503_v42, %v505_v26  ;;  %v485_v61 = vsel %vm484_vm4, %v479_v13, %v481_v41  ;;  %v506_v62 = vsel %vm484_vm4, %v501_v14, %v503_v42 }
 0x174   : > { %757 = vmatpush1.bf16.msra.mxu0 %v368_v43  ;;  %798 = vmatpush1.bf16.msra.mxu1 %v386_v44 }
 0x175   : > { %v590_v45 = vpop.permute.xlu1 %589  ;;  %v611_v46 = vpop.permute.xlu0 %610 }
 0x176   : > { %v593_v10 = vsel %vm415_vm3, %v1570_v20, %v590_v45  ;;  %v614_v11 = vsel %vm415_vm3, %v1568_v18, %v611_v46 }
 0x179   : > { %v453_v47 = vpop.permute.xlu1 %452  ;;  %v431_v48 = vpop.permute.xlu0 %430 }
 0x17d   : > { %v563_v49 = vpop.permute.xlu1 %562  ;;  %v542_v50 = vpop.permute.xlu0 %541 }
 0x181   : > { %v429_v51 = vpop.permute.xlu1 %428  ;;  %v451_v52 = vpop.permute.xlu0 %450 }
 0x182   : > { %v434_v53 = vsel %vm432_vm2, %v429_v51, %v431_v48  ;;  %v455_v54 = vsel %vm432_vm2, %v451_v52, %v453_v47  ;;  %v433_v55 = vsel %vm432_vm2, %v427_v24, %v429_v51  ;;  %v454_v56 = vsel %vm432_vm2, %v449_v23, %v451_v52 }
 0x183   : > { %758 = vmatprep.subr.bf16.mxu0 %v434_v53  ;;  %799 = vmatprep.subr.bf16.mxu1 %v455_v54 }
 0x184   : > { %759 = vmatpush1.bf16.msra.mxu0 %v433_v55  ;;  %800 = vmatpush1.bf16.msra.mxu1 %v454_v56 }
 0x185   : > { %v629_v59 = vpop.permute.xlu1 %628  ;;  %760 = vmatprep.subr.bf16.mxu0 %v486_v57  ;;  %801 = vmatprep.subr.bf16.mxu1 %v507_v58  ;;  %v1122_v60 = vpop.permute.xlu0 %1121 }
 0x186   : > { %v1123_v8 = vunpack.i.l.bf16 %v1122_v60 }
 0x188   : > { %761 = vmatpush1.bf16.msra.mxu0 %v485_v61  ;;  %802 = vmatpush1.bf16.msra.mxu1 %v506_v62  ;;  %v634_v12 = vsel %vm632_vm7, %v629_v59, %v1123_v8 }
 0x189   : > { %v627_v0 = vpop.permute.xlu1 %626  ;;  %v648_v1 = vpop.permute.xlu0 %647  ;;  %762 = vmatprep.subr.bf16.mxu0 %v1473_v16  ;;  %803 = vmatprep.subr.bf16.mxu1 %v1482_v19  ;;  %v1124_v16 = vunpack.i.h.bf16 %v1122_v60 }
 0x18a   : > { %v633_v23 = vsel %vm632_vm7, %v627_v0, %v629_v59 }
 0x18b   : > { %v652_v13 = vsel %vm632_vm7, %v648_v1, %v1124_v16 }
 0x18c   : > { %763 = vmatpush1.bf16.msra.mxu0 %v1469_v15  ;;  %804 = vmatpush1.bf16.msra.mxu1 %v1478_v17  ;;  %v594_v15 = vsel %vm415_vm3, %v590_v45, %v1574_v29  ;;  %v615_v17 = vsel %vm415_vm3, %v611_v46, %v1576_v30 }
 0x18d   : > { %v540_v2 = vpop.permute.xlu1 %539  ;;  %v561_v3 = vpop.permute.xlu0 %560 }
 0x18e   : > { %v544_v4 = vsel %vm467_vm1, %v540_v2, %v542_v50  ;;  %v565_v5 = vsel %vm467_vm1, %v561_v3, %v563_v49  ;;  %v543_v6 = vsel %vm467_vm1, %v538_v28, %v540_v2  ;;  %v564_v7 = vsel %vm467_vm1, %v1572_v27, %v561_v3 }
 0x18f   : > { %764 = vmatprep.subr.bf16.mxu0 %v544_v4  ;;  %805 = vmatprep.subr.bf16.mxu1 %v565_v5  ;;  %v1026_v27 = vcombine.low %v1551_v63, %v1551_v63 }
 0x190   : > { %765 = vmatpush1.bf16.msra.mxu0 %v543_v6  ;;  %806 = vmatpush1.bf16.msra.mxu1 %v564_v7 }
 0x191   : > { %v646_v19 = vpop.permute.xlu1 %645  ;;  %766 = vmatprep.subr.bf16.mxu0 %v594_v15  ;;  %807 = vmatprep.subr.bf16.mxu1 %v615_v17  ;;  %v675_v9 = vpop.permute.xlu0 %674 }
 0x192   : > { %v651_v24 = vsel %vm632_vm7, %v646_v19, %v648_v1 }
 0x194   : > { %767 = vmatpush1.bf16.msra.mxu0 %v593_v10  ;;  %808 = vmatpush1.bf16.msra.mxu1 %v614_v11 }
 0x195   : > { %v679_v14 = vpop.permute.xlu1 %678  ;;  %v677_v21 = vpop.permute.xlu0 %676  ;;  %768 = vmatprep.subr.bf16.mxu0 %v634_v12  ;;  %809 = vmatprep.subr.bf16.mxu1 %v652_v13 }
 0x196   : > { %v681_v22 = vsel %vm309_vm0, %v677_v21, %v679_v14  ;;  %v680_v26 = vsel %vm309_vm0, %v675_v9, %v677_v21 }
 0x198   : > { %769 = vmatpush1.bf16.msra.mxu0 %v633_v23  ;;  %810 = vmatpush1.bf16.msra.mxu1 %v651_v24 }
 0x199   : > { %v698_v25 = vpop.permute.xlu1 %697  ;;  %v700_v20 = vpop.permute.xlu0 %699  ;;  %770 = vmatprep.subr.bf16.mxu0 %v681_v22 }
 0x19a   : > { %v702_v18 = vsel %vm309_vm0, %v698_v25, %v700_v20 }
 0x19b   : > { %811 = vmatprep.subr.bf16.mxu1 %v702_v18 }
 0x19c   : > { %771 = vmatpush1.bf16.msra.mxu0 %v680_v26 }
 0x19d   : > { %v696_v28 = vpop.permute.xlu1 %695 }
 0x19e   : > { %v701_v29 = vsel %vm309_vm0, %v696_v28, %v698_v25 }
 0x19f   : > { %787 = vmatmul.mubr.bf16.vlgmr.msra.gmra.mrb[0].mxu0 %v1026_v27  ;;  %812 = vmatpush1.bf16.msra.mxu1 %v701_v29 }
 0x1a2   : > { %828 = vmatmul.mubr.bf16.vlgmr.msra.gmra.mrb[0].mxu1 %v1026_v27 }
 0x272   : > { %v788_v30 = vpop.f32.mrb[0].mxu0 }
 0x273   : > { %v790_v31 = vpop.f32.mrb[1].mxu0  ;;  %v848_v32 = vmul.f32 %v788_v30, %v788_v30 }
 0x274   : > { %v1041_v33 = vpack.c.bf16 %v790_v31, %v788_v30  ;;  %v792_v34 = vpop.f32.mrb[2].mxu0  ;;  %v845_v35 = vadd.f32 %v790_v31, %v788_v30  ;;  %v849_v36 = vmul.f32 %v790_v31, %v790_v31 }
 0x275   : > { %v793_v37 = vpop.f32.mrb[3].mxu0  ;;  %v829_v38 = vpop.f32.mrb[0].mxu1 }
 0x276   : > { %844 = vst [vmem:[%s230_s14] sm:$0xff] %v1041_v33  ;;  %v831_v63 = vpop.f32.mrb[1].mxu1  ;;  %846 = vadd.xlane.f32.xlu0 %v845_v35  ;;  %v850_v39 = vadd.f32 %v849_v36, %v848_v32  ;;  %v866_v40 = vmul.f32 %v829_v38, %v829_v38 }
 0x277   : > { %v1042_v41 = vpack.c.bf16 %v831_v63, %v829_v38  ;;  %v833_v42 = vpop.f32.mrb[2].mxu1  ;;  %v863_v43 = vadd.f32 %v831_v63, %v829_v38  ;;  %v867_v44 = vmul.f32 %v831_v63, %v831_v63 }
 0x278   : > { %v834_v45 = vpop.f32.mrb[3].mxu1 }
 0x279   : > { %1032 = vst [vmem:[%s230_s14 + $0x8] sm:$0xff] %v1042_v41  ;;  %864 = vadd.xlane.f32.xlu1 %v863_v43  ;;  %v868_v46 = vadd.f32 %v867_v44, %v866_v40 }
 0x27a   : > { %851 = vadd.xlane.f32.xlu0 %v850_v39 }
 0x27e   : > { %869 = vadd.xlane.f32.xlu0 %v868_v46 }
 0x27f   : > { %1204 = shalt.err (!%p1201_p13)
}
 0x280   : > { %s1205_s30 = scalar_lea.hbm %s1624_s29, 256  ;;  %s1209_s11 = scalar_lea.hbm %s1677_s3, 512 }
 0x281   : > { %p1206_p7 = scmp.ne.s32.totalorder %s1624_s29, %s1205_s30  ;;  %p1210_p1 = scmp.lt.u32.totalorder %s1624_s29, %s1677_s3 }
 0x282   : > { %p1211_p11 = scmp.lt.u32.totalorder %s1209_s11, %s1205_s30  ;;  %p1213_p9 = scmp.lt.u32.totalorder %s1205_s30, %s1624_s29 }
 0x283   : > { %p1207_p3 = pnand %p1206_p7, %p1697_p10 }
 0x284   : > { %p1212_p8 = por %p1211_p11, %p1210_p1 }
 0x285   : > { %p1208_p12 = pneg %p1207_p3 }
 0x286   : > { %p1214_p2 = por %p1213_p9, %p1212_p8 }
 0x288   : > { %p1215_p4 = pnand %p1214_p2, %p1208_p12 }
 0x28a   : > { %1218 = shalt.err (!%p1215_p4)
}
 0x28b   : > { %s1277_s9 = smov 128   ;;  %s1278_s23 = smov 8   ;;  %vm873_vm8 = vcmask 15360   ;;  %vm875_vm9 = vcmask 23552   ;;  %vm877_vm10 = vcmask 31744  }
 0x28c   : > { %1051 = dma.vmem_to_hbm [thread:$0]  (%p1697_p10), %s1619_s22, 256, %s1624_s29, %s880_s8, %s1277_s9, %s1277_s9, %s1278_s23  }
 0x28d   : > { %p239_p5 = scmp.lt.s32.totalorder %s1325_s19, 1 }
 0x28f   : > { %s1705_s19 = smov (!%p239_p5, %s1325_s19), 1 }
 0x290   : > { %s1020_s25 = sshll.u32 %s1705_s19, 3 }
 0x291   : > { %s242_s20 = scalar_lea.vmem %s1678_s4, %s1020_s25 }
 0x303   : > { %v847_v47 = vpop.xlane.xlu0 %846 }
 0x306   : > { %v865_v48 = vpop.xlane.xlu1 %864 }
 0x307   : > { %v852_v49 = vpop.xlane.xlu0 %851  ;;  %v872_v50 = vsel %vm484_vm4, %v847_v47, %v865_v48 }
 0x308   : > { %v874_v51 = vsel %vm873_vm8, %v872_v50, %v852_v49 }
 0x30b   : > { %v870_v52 = vpop.xlane.xlu0 %869 }
 0x30c   : > { %v876_v53 = vsel %vm875_vm9, %v874_v51, %v870_v52 }
 0x30d   : > { %878 = vst.msk [vmem:[%s242_s20] sm:$0xff] %vm877_vm10, %v876_v53 }
 0x30e PF: > { %s916_s27 = sand.u32 1, %s1249_s15   ;;  %p1698_p10 = scmp.ne.s32.totalorder %s1687_s28, 0 }
 0x30f   : > { %p1699_p0 = scmp.ge.s32.totalorder %s1261_s18, 2  ;;  %s917_s19 = scalar_lea.sflag [#allocation6], %s916_s27 }
 0x311   : > { %p1062_p6 = pnand %p1699_p0, %p1698_p10 }
 0x313   : > { %1244 = dma.done.wait (!%p1062_p6), %s917_s19, 256  }
 0x314   : > { %1246 = vsyncadd (!%p1062_p6), %s917_s19, 4294967040  ;;  %p19_p13 = scmp.ge.s32.totalorder %s1329_s21, 4   ;;  %s1700_s15 = smov %s1253_s16 }
 0x315   : > { %s1701_s16 = smov %s1257_s17  ;;  %s1702_s17 = smov %s1341_s24 }
 0x316   : > { %s1703_s18 = smov %s1329_s21  ;;  %21 = sbr.rel (!%p19_p13) target bundleno = 6 (0x6), region = 95 }
 0x31d   :  { %929 = vsyncpa [#allocation5], 1 }
 0x31e   :  { %931 = vsyncpa [#allocation5 + $0x1], 1 }
 0x31f   :  { %932 = vsyncpa [#allocation8], 1 }
 0x320   :  { %933 = vsyncpa [#allocation6], 1 }
 0x321   :  { %935 = vsyncpa [#allocation6 + $0x1], 1 }

</bundles_post_ra>
